<compile_context>
chip_gen: v7x
topology: tpu7x:2x2x1
jax: 0.10.0
libtpu: 0.0.40
codegen_flags: <defaults>
</compile_context>

<pallas_src>
import functools

import jax
import jax.numpy as jnp
from jax import lax
from jax.experimental import pallas as pl
from jax.experimental.pallas import tpu as pltpu

_LANE = 128
_SUB = 8
_MAX_BLOCK_ROWS = 4096                 # (4096, 128) f32 = 2 MiB per input per step
_VMEM_LIMIT_BYTES = 32 * 1024 * 1024   # raises v5e's 16 MiB default; safe on v6e/v7x


def _num_tensorcores() -> int:
    """Best-effort count of TensorCores one Pallas kernel can shard across."""
    try:
        kind = jax.devices()[0].device_kind.lower()
    except Exception:
        return 1
    # 2-TC chips: v7x, plus megacore v4 / v5p. v5e / v6e are single-TC.
    if any(tag in kind for tag in ("v7", "7x", "v4", "v5p")):
        return 2
    return 1


def _partial_sums_kernel(x_ref, y_ref, sx_ref, sy_ref, sq_ref, *,
                         rows, block_rows, num_cores, blocks_per_core,
                         may_be_ragged):
    if num_cores == 1:
        blk = pl.program_id(0)
        first_step = blk == 0
    else:
        c = pl.program_id(0)           # core-parallel axis
        j = pl.program_id(1)           # per-core sequential reduction axis
        blk = c * blocks_per_core + j  # logical (unclamped) block index
        first_step = j == 0

    @pl.when(first_step)
    def _():
        sx_ref[...] = jnp.zeros_like(sx_ref)
        sy_ref[...] = jnp.zeros_like(sy_ref)
        sq_ref[...] = jnp.zeros_like(sq_ref)

    x = x_ref[...].astype(jnp.float32)
    y = y_ref[...].astype(jnp.float32)

    def tile_sum(v):
        # (block_rows, 128) -> (1, 8, 128). The leading-dim split is layout
        # free; the axis-1 reduction is a chain of whole-vreg VPU adds.
        return jnp.sum(v.reshape(1, -1, _SUB, _LANE), axis=1)

    def accumulate(xv, yv):
        d = xv - yv
        sx_ref[...] += tile_sum(xv)
        sy_ref[...] += tile_sum(yv)
        sq_ref[...] += tile_sum(d * d)

    if not may_be_ragged:
        accumulate(x, y)               # static mask-free fast path
    else:
        row0 = blk * block_rows
        interior = row0 + block_rows <= rows

        @pl.when(interior)
        def _():
            accumulate(x, y)           # hot path: no iota / select work

        @pl.when(jnp.logical_not(interior))
        def _():
            # Edge block (partially valid rows) or phantom block from an
            # uneven per-core split (clamped re-read of the last real block):
            # zero out every row past the true end of the data.
            rid = row0 + lax.broadcasted_iota(jnp.int32, (block_rows, _LANE), 0)
            valid = rid < rows
            accumulate(jnp.where(valid, x, 0.0), jnp.where(valid, y, 0.0))


def _partial_sums(x2d, y2d):
    """Per-lane/sublane partial sums of x, y and (x - y)^2 over a (rows, 128) view."""
    rows = x2d.shape[0]
    assert rows >= _SUB and x2d.shape[1] == _LANE

    # Largest block that fits the streaming budget; always a multiple of 8
    # (so in-kernel (…, 8, 128) tiling is exact) and never larger than rows.
    block_rows = min(_MAX_BLOCK_ROWS, (rows // _SUB) * _SUB)
    total_blocks = pl.cdiv(rows, block_rows)

    num_cores = _num_tensorcores()
    if total_blocks < 2 or num_cores < 2:
        num_cores = 1
    blocks_per_core = pl.cdiv(total_blocks, num_cores)
    may_be_ragged = (num_cores * blocks_per_core * block_rows) != rows

    if num_cores == 1:
        grid = (total_blocks,)
        dims = ("arbitrary",)
        in_map = lambda j: (j, 0)
        out_map = lambda j: (0, 0, 0)
    else:
        grid = (num_cores, blocks_per_core)
        # TODO(synk): if plain "parallel" does not shard across the two
        # TensorCores on v7x, switch this axis to pltpu.CORE_PARALLEL.
        dims = ("parallel", "arbitrary")
        # Phantom blocks from an uneven core split are clamped to the last
        # real block (in-bounds DMA); the kernel masks them to zero.
        in_map = lambda c, j: (
            jnp.minimum(c * blocks_per_core + j, total_blocks - 1), 0)
        out_map = lambda c, j: (c, 0, 0)

    in_spec = pl.BlockSpec((block_rows, _LANE), in_map)
    out_spec = pl.BlockSpec((1, _SUB, _LANE), out_map)
    out_sds = jax.ShapeDtypeStruct((num_cores, _SUB, _LANE), jnp.float32)

    kernel = functools.partial(
        _partial_sums_kernel,
        rows=rows,
        block_rows=block_rows,
        num_cores=num_cores,
        blocks_per_core=blocks_per_core,
        may_be_ragged=may_be_ragged,
    )

    return pl.pallas_call(
        kernel,
        out_shape=(out_sds, out_sds, out_sds),
        grid_spec=pltpu.PrefetchScalarGridSpec(
            num_scalar_prefetch=0,
            grid=grid,
            in_specs=[in_spec, in_spec],
            out_specs=[out_spec, out_spec, out_spec],
        ),
        compiler_params=pltpu.CompilerParams(
            dimension_semantics=dims,
            vmem_limit_bytes=_VMEM_LIMIT_BYTES,
        ),
    )(x2d, y2d)


@jax.jit
def my_mse_loss(x, y):
    """Pallas implementation of My_MSE_loss.forward(x, y) -> scalar f32."""
    assert x.shape == y.shape, "x and y must have the same shape"
    n = x.size
    assert n > 0

    xf = x.reshape(-1)                 # native dtype; no wrapper-side cast/pad
    yf = y.reshape(-1)

    rows = n // _LANE
    use_kernel = rows >= _SUB          # at least one (8, 128) tile of data
    main = rows * _LANE if use_kernel else 0
    tail = n - main                    # < 128 elements (or all of a tiny input)

    sum_x = jnp.float32(0.0)
    sum_y = jnp.float32(0.0)
    sum_sq = jnp.float32(0.0)

    if use_kernel:
        # TODO(synk): when n % 128 != 0 the prefix slice below may force XLA
        # to materialize a copy of the main region; a manual-DMA variant
        # (memory_space=pl.ANY + pl.ds windows) would avoid that HBM traffic.
        xm = (xf if tail == 0 else xf[:main]).reshape(rows, _LANE)
        ym = (yf if tail == 0 else yf[:main]).reshape(rows, _LANE)
        px, py, psq = _partial_sums(xm, ym)
        sum_x = sum_x + jnp.sum(px)
        sum_y = sum_y + jnp.sum(py)
        sum_sq = sum_sq + jnp.sum(psq)

    if tail > 0:
        xt = xf[main:].astype(jnp.float32)
        yt = yf[main:].astype(jnp.float32)
        dt = xt - yt
        sum_x = sum_x + jnp.sum(xt)
        sum_y = sum_y + jnp.sum(yt)
        sum_sq = sum_sq + jnp.sum(dt * dt)

    rmse = jnp.sqrt(sum_sq / jnp.float32(n))
    # Data-dependent branch of the PyTorch module -> scalar select, comparing
    # sum(x) and sum(y) exactly as the original does.
    return jnp.where(sum_x > sum_y, rmse * jnp.float32(10.0), rmse)


if __name__ == "__main__":
    key = jax.random.PRNGKey(0)
    kx, ky = jax.random.split(key)
    x = jax.random.normal(kx, (2, 4, 16, 16), dtype=jnp.float32)
    y = jax.random.normal(ky, (2, 4, 16, 16), dtype=jnp.float32)

    out = my_mse_loss(x, y)
    jax.block_until_ready(out)

    # Pure-JAX reference check (same semantics as the PyTorch module).
    rmse_ref = jnp.sqrt(jnp.mean((x - y) ** 2))
    ref = jnp.where(jnp.sum(x) > jnp.sum(y), rmse_ref * 10.0, rmse_ref)
    assert jnp.allclose(out, ref, rtol=1e-5, atol=1e-5), (out, ref)

    print("KERNEL_OK")
</pallas_src>

<mosaic_0001>
module attributes {stable_mosaic.version = 11 : i64} {
  func.func @_partial_sums_kernel(%arg0: i32, %arg1: memref<16x128xf32, #tpu.memory_space<vmem>>, %arg2: memref<16x128xf32, #tpu.memory_space<vmem>>, %arg3: memref<1x8x128xf32, #tpu.memory_space<vmem>>, %arg4: memref<1x8x128xf32, #tpu.memory_space<vmem>>, %arg5: memref<1x8x128xf32, #tpu.memory_space<vmem>>) attributes {dimension_semantics = [#tpu.dimension_semantics<arbitrary>], iteration_bounds = array<i64: 1>, scalar_prefetch = 0 : i64, scratch_operands = 0 : i64, tpu.core_type = #tpu.core_type<tc>, window_params = [{transform_indices = @transform_0, window_bounds = array<i64: 16, 128>}, {transform_indices = @transform_1, window_bounds = array<i64: 16, 128>}, {pipeline_mode = #tpu.pipeline_mode<synchronous>, transform_indices = @transform_2, window_bounds = array<i64: 1, 8, 128>}, {pipeline_mode = #tpu.pipeline_mode<synchronous>, transform_indices = @transform_3, window_bounds = array<i64: 1, 8, 128>}, {pipeline_mode = #tpu.pipeline_mode<synchronous>, transform_indices = @transform_4, window_bounds = array<i64: 1, 8, 128>}]} {
    %c0_i32 = arith.constant 0 : i32
    %0 = arith.cmpi eq, %arg0, %c0_i32 : i32
    %1 = arith.extui %0 : i1 to i32
    %c0_i32_0 = arith.constant 0 : i32
    %2 = arith.cmpi ne, %1, %c0_i32_0 : i32
    scf.if %2 {
      %cst_24 = arith.constant 0.000000e+00 : f32
      %22 = vector.broadcast %cst_24 : f32 to vector<1x8x128xf32>
      %c0_25 = arith.constant 0 : index
      %c0_26 = arith.constant 0 : index
      %c0_27 = arith.constant 0 : index
      %23 = vector.load %arg3[%c0_25, %c0_26, %c0_27] : memref<1x8x128xf32, #tpu.memory_space<vmem>>, vector<1x8x128xf32>
      tpu.vector_store %arg3[%c0_25, %c0_26, %c0_27], %22 {strides = array<i32>} : memref<1x8x128xf32, #tpu.memory_space<vmem>>, vector<1x8x128xf32>,
      %cst_28 = arith.constant 0.000000e+00 : f32
      %24 = vector.broadcast %cst_28 : f32 to vector<1x8x128xf32>
      %c0_29 = arith.constant 0 : index
      %c0_30 = arith.constant 0 : index
      %c0_31 = arith.constant 0 : index
      %25 = vector.load %arg4[%c0_29, %c0_30, %c0_31] : memref<1x8x128xf32, #tpu.memory_space<vmem>>, vector<1x8x128xf32>
      tpu.vector_store %arg4[%c0_29, %c0_30, %c0_31], %24 {strides = array<i32>} : memref<1x8x128xf32, #tpu.memory_space<vmem>>, vector<1x8x128xf32>,
      %cst_32 = arith.constant 0.000000e+00 : f32
      %26 = vector.broadcast %cst_32 : f32 to vector<1x8x128xf32>
      %c0_33 = arith.constant 0 : index
      %c0_34 = arith.constant 0 : index
      %c0_35 = arith.constant 0 : index
      %27 = vector.load %arg5[%c0_33, %c0_34, %c0_35] : memref<1x8x128xf32, #tpu.memory_space<vmem>>, vector<1x8x128xf32>
      tpu.vector_store %arg5[%c0_33, %c0_34, %c0_35], %26 {strides = array<i32>} : memref<1x8x128xf32, #tpu.memory_space<vmem>>, vector<1x8x128xf32>,
    } else {
    }
    %c0 = arith.constant 0 : index
    %c0_1 = arith.constant 0 : index
    %3 = vector.load %arg1[%c0, %c0_1] : memref<16x128xf32, #tpu.memory_space<vmem>>, vector<16x128xf32>
    %c0_2 = arith.constant 0 : index
    %c0_3 = arith.constant 0 : index
    %4 = vector.load %arg2[%c0_2, %c0_3] : memref<16x128xf32, #tpu.memory_space<vmem>>, vector<16x128xf32>
    %5 = arith.subf %3, %4 : vector<16x128xf32>
    %c0_4 = arith.constant 0 : index
    %c0_5 = arith.constant 0 : index
    %c0_6 = arith.constant 0 : index
    %6 = vector.load %arg3[%c0_4, %c0_5, %c0_6] : memref<1x8x128xf32, #tpu.memory_space<vmem>>, vector<1x8x128xf32>
    %7 = vector.shape_cast %3 : vector<16x128xf32> to vector<1x2x8x128xf32>
    %cst = arith.constant dense<0.000000e+00> : vector<1x8x128xf32>
    %8 = vector.multi_reduction <add>, %7, %cst [1] : vector<1x2x8x128xf32> to vector<1x8x128xf32>
    %9 = arith.addf %6, %8 : vector<1x8x128xf32>
    %c0_7 = arith.constant 0 : index
    %c0_8 = arith.constant 0 : index
    %c0_9 = arith.constant 0 : index
    %10 = vector.load %arg3[%c0_7, %c0_8, %c0_9] : memref<1x8x128xf32, #tpu.memory_space<vmem>>, vector<1x8x128xf32>
    tpu.vector_store %arg3[%c0_7, %c0_8, %c0_9], %9 {strides = array<i32>} : memref<1x8x128xf32, #tpu.memory_space<vmem>>, vector<1x8x128xf32>,
    %c0_10 = arith.constant 0 : index
    %c0_11 = arith.constant 0 : index
    %c0_12 = arith.constant 0 : index
    %11 = vector.load %arg4[%c0_10, %c0_11, %c0_12] : memref<1x8x128xf32, #tpu.memory_space<vmem>>, vector<1x8x128xf32>
    %12 = vector.shape_cast %4 : vector<16x128xf32> to vector<1x2x8x128xf32>
    %cst_13 = arith.constant dense<0.000000e+00> : vector<1x8x128xf32>
    %13 = vector.multi_reduction <add>, %12, %cst_13 [1] : vector<1x2x8x128xf32> to vector<1x8x128xf32>
    %14 = arith.addf %11, %13 : vector<1x8x128xf32>
    %c0_14 = arith.constant 0 : index
    %c0_15 = arith.constant 0 : index
    %c0_16 = arith.constant 0 : index
    %15 = vector.load %arg4[%c0_14, %c0_15, %c0_16] : memref<1x8x128xf32, #tpu.memory_space<vmem>>, vector<1x8x128xf32>
    tpu.vector_store %arg4[%c0_14, %c0_15, %c0_16], %14 {strides = array<i32>} : memref<1x8x128xf32, #tpu.memory_space<vmem>>, vector<1x8x128xf32>,
    %c0_17 = arith.constant 0 : index
    %c0_18 = arith.constant 0 : index
    %c0_19 = arith.constant 0 : index
    %16 = vector.load %arg5[%c0_17, %c0_18, %c0_19] : memref<1x8x128xf32, #tpu.memory_space<vmem>>, vector<1x8x128xf32>
    %17 = arith.mulf %5, %5 : vector<16x128xf32>
    %18 = vector.shape_cast %17 : vector<16x128xf32> to vector<1x2x8x128xf32>
    %cst_20 = arith.constant dense<0.000000e+00> : vector<1x8x128xf32>
    %19 = vector.multi_reduction <add>, %18, %cst_20 [1] : vector<1x2x8x128xf32> to vector<1x8x128xf32>
    %20 = arith.addf %16, %19 : vector<1x8x128xf32>
    %c0_21 = arith.constant 0 : index
    %c0_22 = arith.constant 0 : index
    %c0_23 = arith.constant 0 : index
    %21 = vector.load %arg5[%c0_21, %c0_22, %c0_23] : memref<1x8x128xf32, #tpu.memory_space<vmem>>, vector<1x8x128xf32>
    tpu.vector_store %arg5[%c0_21, %c0_22, %c0_23], %20 {strides = array<i32>} : memref<1x8x128xf32, #tpu.memory_space<vmem>>, vector<1x8x128xf32>,
    return
  }
  func.func @transform_0(%arg0: i32) -> (i32, i32) {
    %c0_i32 = arith.constant 0 : i32
    %c0_i32_0 = arith.constant 0 : i32
    return %arg0, %c0_i32 : i32, i32
  }
  func.func @transform_1(%arg0: i32) -> (i32, i32) {
    %c0_i32 = arith.constant 0 : i32
    %c0_i32_0 = arith.constant 0 : i32
    return %arg0, %c0_i32 : i32, i32
  }
  func.func @transform_2(%arg0: i32) -> (i32, i32, i32) {
    %c0_i32 = arith.constant 0 : i32
    %c0_i32_0 = arith.constant 0 : i32
    %c0_i32_1 = arith.constant 0 : i32
    %c0_i32_2 = arith.constant 0 : i32
    return %c0_i32, %c0_i32_0, %c0_i32_1 : i32, i32, i32
  }
  func.func @transform_3(%arg0: i32) -> (i32, i32, i32) {
    %c0_i32 = arith.constant 0 : i32
    %c0_i32_0 = arith.constant 0 : i32
    %c0_i32_1 = arith.constant 0 : i32
    %c0_i32_2 = arith.constant 0 : i32
    return %c0_i32, %c0_i32_0, %c0_i32_1 : i32, i32, i32
  }
  func.func @transform_4(%arg0: i32) -> (i32, i32, i32) {
    %c0_i32 = arith.constant 0 : i32
    %c0_i32_0 = arith.constant 0 : i32
    %c0_i32_1 = arith.constant 0 : i32
    %c0_i32_2 = arith.constant 0 : i32
    return %c0_i32, %c0_i32_0, %c0_i32_1 : i32, i32, i32
  }
}

</mosaic_0001>

<bundles_post_ra>
// kernel: my_mse_loss.1
= control target key start
LH: loop header
LB: loop body
LE: loop exit
PB: predicated region body
PF: predicated region fallthrough
CT: control target
= control target key end

     0   :  { %s100_s0 = inlined_call_operand.vmem [shape: f32[16,128], index: 0, kind: input, shape index: {}]   ;;  %s101_s1 = inlined_call_operand.vmem [shape: f32[16,128], index: 1, kind: input, shape index: {}]   ;;  %s102_s2 = inlined_call_operand.vmem [shape: f32[1,8,128], index: 2, kind: output, shape index: {0}]   ;;  %s103_s3 = inlined_call_operand.vmem [shape: f32[1,8,128], index: 3, kind: output, shape index: {1}]   ;;  %s104_s4 = inlined_call_operand.vmem [shape: f32[1,8,128], index: 4, kind: output, shape index: {2}]  }
   0x1   :  { %v21_v0 = vld [vmem:[%s100_s0] sm:$0xff]  ;;  %v22_v1 = vld [vmem:[%s100_s0 + $0x8] sm:$0xff] }
   0x2   :  { %v23_v2 = vld [vmem:[%s101_s1] sm:$0xff]  ;;  %v28_v3 = vadd.f32 %v22_v1, %v21_v0  ;;  %v24_v4 = vld [vmem:[%s101_s1 + $0x8] sm:$0xff] }
   0x3   :  { %v25_v5 = vsub.f32 %v21_v0, %v23_v2  ;;  %v26_v6 = vsub.f32 %v22_v1, %v24_v4  ;;  %v32_v7 = vadd.f32 %v24_v4, %v23_v2 }
   0x4   :  { %30 = vst [vmem:[%s102_s2] sm:$0xff] %v28_v3 }
   0x5   :  { %v36_v8 = vmul.f32 %v25_v5, %v25_v5  ;;  %v37_v9 = vmul.f32 %v26_v6, %v26_v6  ;;  %34 = vst [vmem:[%s103_s3] sm:$0xff] %v32_v7 }
   0x7   :  { %v38_v10 = vadd.f32 %v37_v9, %v36_v8 }
   0x9   :  { %40 = vst [vmem:[%s104_s4] sm:$0xff] %v38_v10 }

</bundles_post_ra>
